<compile_context>
chip_gen: v5e
topology: v5e:2x2
jax: 0.10.0
libtpu: 0.0.40
codegen_flags: <defaults>
</compile_context>

<pallas_src>
import numpy as np
import jax
import jax.numpy as jnp
from jax.experimental import pallas as pl
from jax.experimental.pallas import tpu as pltpu


def _sp_sigmoid(x):
    # 2*sigmoid(x) - 1 == tanh(x/2)  (single EUP op)
    return jnp.tanh(0.5 * x)


# ------------------------------ Pallas kernel --------------------------------

def _edge_decoder_kernel(v_out_ref, v_in_ref, u_out_ref, u_in_ref,
                         w_ref, w2_ref, b_ref, out_ref):
    """One row-tile of edges (rows on sublanes, features on lanes).

    v_out_ref / v_in_ref : (row_tile, d_i)
    u_out_ref / u_in_ref : (row_tile, d_e)
    w_ref                : (d_i, d_i)
    w2_ref               : (d_e, d_e)
    b_ref                : (1, 1)  scalar bias, SMEM
    out_ref              : (row_tile, 1)  sigmoid edge scores
    """
    sv_out = _sp_sigmoid(v_out_ref[...])
    sv_in = _sp_sigmoid(v_in_ref[...])
    su_out = _sp_sigmoid(u_out_ref[...])
    su_in = _sp_sigmoid(u_in_ref[...])

    pv = jnp.dot(sv_out, w_ref[...], preferred_element_type=jnp.float32)
    pu = jnp.dot(su_out, w2_ref[...], preferred_element_type=jnp.float32)

    term = (jnp.sum(pv * sv_in, axis=1, keepdims=True)
            + jnp.sum(pu * su_in, axis=1, keepdims=True))
    out_ref[...] = jax.nn.sigmoid(term + b_ref[0, 0])


# ------------------------------ wrapper ---------------------------------------

def edge_decoder(v_out, v_in, u_out, u_in, W, W2, b, *, row_tile=32768):
    """Forward pass of InnerProductDiEdgeDecoder.

    v_out, v_in : (E, dim_interest)
    u_out, u_in : (E, dim_edge)
    W           : (dim_interest, dim_interest)
    W2          : (dim_edge, dim_edge)
    b           : scalar / (1,)
    returns     : (E,) edge probabilities
    """
    f32 = jnp.float32
    E, d_i = v_out.shape
    d_e = u_out.shape[1]

    def _round_up(x, m):
        return ((x + m - 1) // m) * m

    # Large tiles amortize the ~0.35 us/step pipeline overhead; cap so there
    # are >= 8 grid tiles (v7x megacore sharding) whenever E allows it.
    cap = max(8, _round_up(-(-E // 8), 8))
    rt = max(8, _round_up(min(int(row_tile), cap), 8))
    n_tiles = -(-E // rt)

    v_out = v_out.astype(f32)
    v_in = v_in.astype(f32)
    u_out = u_out.astype(f32)
    u_in = u_in.astype(f32)
    W = W.astype(f32)
    W2 = W2.astype(f32)
    b2d = jnp.asarray(b, f32).reshape(1, 1)

    out = pl.pallas_call(
        _edge_decoder_kernel,
        out_shape=jax.ShapeDtypeStruct((E, 1), f32),
        grid=(n_tiles,),
        in_specs=[
            pl.BlockSpec((rt, d_i), lambda i: (i, 0)),
            pl.BlockSpec((rt, d_i), lambda i: (i, 0)),
            pl.BlockSpec((rt, d_e), lambda i: (i, 0)),
            pl.BlockSpec((rt, d_e), lambda i: (i, 0)),
            pl.BlockSpec((d_i, d_i), lambda i: (0, 0)),
            pl.BlockSpec((d_e, d_e), lambda i: (0, 0)),
            pl.BlockSpec(memory_space=pltpu.MemorySpace.SMEM),
        ],
        out_specs=pl.BlockSpec((rt, 1), lambda i: (i, 0)),
        compiler_params=pltpu.CompilerParams(
            dimension_semantics=("parallel",)),
    )(v_out, v_in, u_out, u_in, W, W2, b2d)

    return out[:, 0]


# --------------------------- pure-JAX reference -------------------------------

def ref_edge_decoder(v_out, v_in, u_out, u_in, W, W2, b):
    def sp(x):
        return 2.0 * jax.nn.sigmoid(x) - 1.0
    tv = jnp.sum((sp(v_out) @ W) * sp(v_in), axis=1)
    tu = jnp.sum((sp(u_out) @ W2) * sp(u_in), axis=1)
    return jax.nn.sigmoid(tv + tu + jnp.asarray(b, jnp.float32).reshape(-1)[0])


# ----------------------------------- main -------------------------------------

if __name__ == "__main__":
    E = 777                 # edge pairs (not a tile multiple -> exercises ragged boundary)
    dim_interest = 8
    dim_edge = 4

    key = jax.random.PRNGKey(0)
    ks = jax.random.split(key, 7)
    v_out = jax.random.normal(ks[0], (E, dim_interest), jnp.float32)
    v_in = jax.random.normal(ks[1], (E, dim_interest), jnp.float32)
    u_out = jax.random.normal(ks[2], (E, dim_edge), jnp.float32)
    u_in = jax.random.normal(ks[3], (E, dim_edge), jnp.float32)

    # Module init is eye/eye/0; perturb so the W / W2 / b paths are actually tested.
    W = jnp.eye(dim_interest, dtype=jnp.float32) \
        + 0.1 * jax.random.normal(ks[4], (dim_interest, dim_interest), jnp.float32)
    W2 = jnp.eye(dim_edge, dtype=jnp.float32) \
        + 0.1 * jax.random.normal(ks[5], (dim_edge, dim_edge), jnp.float32)
    b = 0.1 * jax.random.normal(ks[6], (1,), jnp.float32)

    out = edge_decoder(v_out, v_in, u_out, u_in, W, W2, b)
    out = jax.block_until_ready(out)

    ref = ref_edge_decoder(v_out, v_in, u_out, u_in, W, W2, b)

    if np.allclose(np.asarray(out), np.asarray(ref), rtol=1e-5, atol=1e-5):
        print("KERNEL_OK")
    else:
        print("MISMATCH", float(np.max(np.abs(np.asarray(out) - np.asarray(ref)))))
</pallas_src>

<mosaic_0001>
module attributes {stable_mosaic.version = 11 : i64} {
  func.func @_edge_decoder_kernel(%arg0: i32, %arg1: memref<104x8xf32, #tpu.memory_space<vmem>>, %arg2: memref<104x8xf32, #tpu.memory_space<vmem>>, %arg3: memref<104x4xf32, #tpu.memory_space<vmem>>, %arg4: memref<104x4xf32, #tpu.memory_space<vmem>>, %arg5: memref<8x8xf32, #tpu.memory_space<vmem>>, %arg6: memref<4x4xf32, #tpu.memory_space<vmem>>, %arg7: memref<1x1xf32, #tpu.memory_space<smem>>, %arg8: memref<104x1xf32, #tpu.memory_space<vmem>>) attributes {dimension_semantics = [#tpu.dimension_semantics<parallel>], iteration_bounds = array<i64: 8>, scalar_prefetch = 0 : i64, scratch_operands = 0 : i64, tpu.core_type = #tpu.core_type<tc>, window_params = [{transform_indices = @transform_0, window_bounds = array<i64: 104, 8>}, {transform_indices = @transform_1, window_bounds = array<i64: 104, 8>}, {transform_indices = @transform_2, window_bounds = array<i64: 104, 4>}, {transform_indices = @transform_3, window_bounds = array<i64: 104, 4>}, {pipeline_mode = #tpu.pipeline_mode<synchronous>, transform_indices = @transform_4, window_bounds = array<i64: 8, 8>}, {pipeline_mode = #tpu.pipeline_mode<synchronous>, transform_indices = @transform_5, window_bounds = array<i64: 4, 4>}, {transform_indices = @transform_6, window_bounds = array<i64: 1, 1>}, {transform_indices = @transform_7, window_bounds = array<i64: 104, 1>}]} {
    %c0 = arith.constant 0 : index
    %c0_0 = arith.constant 0 : index
    %0 = vector.load %arg1[%c0, %c0_0] : memref<104x8xf32, #tpu.memory_space<vmem>>, vector<104x8xf32>
    %cst = arith.constant 5.000000e-01 : f32
    %1 = vector.broadcast %cst : f32 to vector<104x8xf32>
    %2 = arith.mulf %1, %0 : vector<104x8xf32>
    %3 = math.tanh %2 : vector<104x8xf32>
    %c0_1 = arith.constant 0 : index
    %c0_2 = arith.constant 0 : index
    %4 = vector.load %arg2[%c0_1, %c0_2] : memref<104x8xf32, #tpu.memory_space<vmem>>, vector<104x8xf32>
    %cst_3 = arith.constant 5.000000e-01 : f32
    %5 = vector.broadcast %cst_3 : f32 to vector<104x8xf32>
    %6 = arith.mulf %5, %4 : vector<104x8xf32>
    %7 = math.tanh %6 : vector<104x8xf32>
    %c0_4 = arith.constant 0 : index
    %c0_5 = arith.constant 0 : index
    %8 = vector.load %arg3[%c0_4, %c0_5] : memref<104x4xf32, #tpu.memory_space<vmem>>, vector<104x4xf32>
    %cst_6 = arith.constant 5.000000e-01 : f32
    %9 = vector.broadcast %cst_6 : f32 to vector<104x4xf32>
    %10 = arith.mulf %9, %8 : vector<104x4xf32>
    %11 = math.tanh %10 : vector<104x4xf32>
    %c0_7 = arith.constant 0 : index
    %c0_8 = arith.constant 0 : index
    %12 = vector.load %arg4[%c0_7, %c0_8] : memref<104x4xf32, #tpu.memory_space<vmem>>, vector<104x4xf32>
    %cst_9 = arith.constant 5.000000e-01 : f32
    %13 = vector.broadcast %cst_9 : f32 to vector<104x4xf32>
    %14 = arith.mulf %13, %12 : vector<104x4xf32>
    %15 = math.tanh %14 : vector<104x4xf32>
    %c0_10 = arith.constant 0 : index
    %c0_11 = arith.constant 0 : index
    %16 = vector.load %arg5[%c0_10, %c0_11] : memref<8x8xf32, #tpu.memory_space<vmem>>, vector<8x8xf32>
    %cst_12 = arith.constant dense<0.000000e+00> : vector<104x8xf32>
    %17 = tpu.matmul %3, %16, %cst_12 {dimension_numbers = #tpu.dot_dimension_numbers<[1], [0], [0], [1], [0, 0, 1, 1], [], []>} : vector<104x8xf32>, vector<8x8xf32>, vector<104x8xf32> -> vector<104x8xf32>
    %c0_13 = arith.constant 0 : index
    %c0_14 = arith.constant 0 : index
    %18 = vector.load %arg6[%c0_13, %c0_14] : memref<4x4xf32, #tpu.memory_space<vmem>>, vector<4x4xf32>
    %cst_15 = arith.constant dense<0.000000e+00> : vector<104x4xf32>
    %19 = tpu.matmul %11, %18, %cst_15 {dimension_numbers = #tpu.dot_dimension_numbers<[1], [0], [0], [1], [0, 0, 1, 1], [], []>} : vector<104x4xf32>, vector<4x4xf32>, vector<104x4xf32> -> vector<104x4xf32>
    %20 = arith.mulf %17, %7 : vector<104x8xf32>
    %cst_16 = arith.constant dense<0.000000e+00> : vector<104xf32>
    %21 = vector.multi_reduction <add>, %20, %cst_16 [1] : vector<104x8xf32> to vector<104xf32>
    %22 = vector.shape_cast %21 : vector<104xf32> to vector<104x1xf32>
    %23 = arith.mulf %19, %15 : vector<104x4xf32>
    %cst_17 = arith.constant dense<0.000000e+00> : vector<104xf32>
    %24 = vector.multi_reduction <add>, %23, %cst_17 [1] : vector<104x4xf32> to vector<104xf32>
    %25 = vector.shape_cast %24 : vector<104xf32> to vector<104x1xf32>
    %26 = arith.addf %22, %25 : vector<104x1xf32>
    %c0_18 = arith.constant 0 : index
    %c0_19 = arith.constant 0 : index
    %27 = memref.load %arg7[%c0_18, %c0_19] : memref<1x1xf32, #tpu.memory_space<smem>>
    %28 = vector.broadcast %27 : f32 to vector<104x1xf32>
    %29 = arith.addf %26, %28 : vector<104x1xf32>
    %30 = arith.negf %29 : vector<104x1xf32>
    %31 = math.exp %30 : vector<104x1xf32>
    %cst_20 = arith.constant 1.000000e+00 : f32
    %32 = vector.broadcast %cst_20 : f32 to vector<104x1xf32>
    %33 = arith.addf %32, %31 : vector<104x1xf32>
    %34 = arith.divf %32, %33 : vector<104x1xf32>
    %c0_21 = arith.constant 0 : index
    %c0_22 = arith.constant 0 : index
    %35 = vector.load %arg8[%c0_21, %c0_22] : memref<104x1xf32, #tpu.memory_space<vmem>>, vector<104x1xf32>
    tpu.vector_store %arg8[%c0_21, %c0_22], %34 {strides = array<i32>} : memref<104x1xf32, #tpu.memory_space<vmem>>, vector<104x1xf32>,
    return
  }
  func.func @transform_0(%arg0: i32) -> (i32, i32) {
    %c0_i32 = arith.constant 0 : i32
    %c0_i32_0 = arith.constant 0 : i32
    return %arg0, %c0_i32 : i32, i32
  }
  func.func @transform_1(%arg0: i32) -> (i32, i32) {
    %c0_i32 = arith.constant 0 : i32
    %c0_i32_0 = arith.constant 0 : i32
    return %arg0, %c0_i32 : i32, i32
  }
  func.func @transform_2(%arg0: i32) -> (i32, i32) {
    %c0_i32 = arith.constant 0 : i32
    %c0_i32_0 = arith.constant 0 : i32
    return %arg0, %c0_i32 : i32, i32
  }
  func.func @transform_3(%arg0: i32) -> (i32, i32) {
    %c0_i32 = arith.constant 0 : i32
    %c0_i32_0 = arith.constant 0 : i32
    return %arg0, %c0_i32 : i32, i32
  }
  func.func @transform_4(%arg0: i32) -> (i32, i32) {
    %c0_i32 = arith.constant 0 : i32
    %c0_i32_0 = arith.constant 0 : i32
    %c0_i32_1 = arith.constant 0 : i32
    return %c0_i32, %c0_i32_0 : i32, i32
  }
  func.func @transform_5(%arg0: i32) -> (i32, i32) {
    %c0_i32 = arith.constant 0 : i32
    %c0_i32_0 = arith.constant 0 : i32
    %c0_i32_1 = arith.constant 0 : i32
    return %c0_i32, %c0_i32_0 : i32, i32
  }
  func.func @transform_6(%arg0: i32) -> (i32, i32) {
    %c0_i32 = arith.constant 0 : i32
    %c0_i32_0 = arith.constant 0 : i32
    %c0_i32_1 = arith.constant 0 : i32
    return %c0_i32, %c0_i32_0 : i32, i32
  }
  func.func @transform_7(%arg0: i32) -> (i32, i32) {
    %c0_i32 = arith.constant 0 : i32
    %c0_i32_0 = arith.constant 0 : i32
    return %arg0, %c0_i32 : i32, i32
  }
}

</mosaic_0001>

<bundles_post_ra>
// kernel: tpu_custom_call.1
= control target key start
LH: loop header
LB: loop body
LE: loop exit
PB: predicated region body
PF: predicated region fallthrough
CT: control target
= control target key end

     0   :  { %s2307_s0 = inlined_call_operand.vmem [shape: f32[777,8], index: 0, kind: input, shape index: {}]   ;;  %s2308_s1 = inlined_call_operand.vmem [shape: f32[777,8], index: 1, kind: input, shape index: {}]   ;;  %s2309_s2 = inlined_call_operand.vmem [shape: f32[777,4], index: 2, kind: input, shape index: {}]   ;;  %s2310_s3 = inlined_call_operand.vmem [shape: f32[777,4], index: 3, kind: input, shape index: {}]   ;;  %s2311_s4 = inlined_call_operand.vmem [shape: f32[8,8], index: 4, kind: input, shape index: {}]   ;;  %s2312_s5 = inlined_call_operand.vmem [shape: f32[4,4], index: 5, kind: input, shape index: {}]   ;;  %s2313_s6 = inlined_call_operand.<no memory space> [shape: f32[1,1], index: 6, kind: input, shape index: {}]   ;;  %s2314_s7 = inlined_call_operand.vmem [shape: f32[777,1], index: 7, kind: output, shape index: {}]  }
   0x1   :  { %12 = sst [smem:[#allocation2]] %s2313_s6 }
   0x2   :  { %s1922_s26 = smov 0   ;;  %s1924_s27 = smov 0  }
   0x3   :  { %s1926_s28 = smov 0  }
   0x4 LB: > { %s1935_s6 = sadd.s32 4294967295, %s1845_s28   ;;  %s1937_s29 = sadd.s32 1, %s1845_s28   ;;  %s1845_s28 = sphi %s1926_s28, %s2329_s28   ;;  %s1841_s27 = sphi %s1924_s27, %s2328_s27   ;;  %s1837_s26 = sphi %s1922_s26, %s2327_s26  }
   0x5   : > { %s189_s30 = ssub.s32 %s1845_s28, %s1937_s29  ;;  %s192_s8 = sadd.s32 1, %s1841_s27 }
   0x6   : > { %p190_p0 = scmp.eq.s32.totalorder %s189_s30, 0  ;;  %p202_p1 = scmp.ne.s32.totalorder %s1841_s27, %s1837_s26 }
   0x7   : > { %p203_p2 = scmp.eq.s32.totalorder %s1935_s6, 7  ;;  %p1479_p3 = scmp.ge.s32.totalorder %s1845_s28, 1 }
   0x8   : > { %s1945_s9 = scalar_select %p190_p0, %s1841_s27, %s192_s8  }
   0x9   : > { %p1947_p4 = por %p203_p2, %p202_p1  ;;  %p304_p5 = scmp.lt.s32.totalorder %s1845_s28, 9 }
   0xb   : > { %p305_p6 = pnand %p1479_p3, %p304_p5 }
   0xc   : > { %s1958_s15 = smul.u32 (!%p305_p6), 13, %s1935_s6  ;;  %s898_s12 = sld [smem:[#allocation2]] (!%p305_p6) }
   0xd   : > { %308 = sbr.rel (%p305_p6) target bundleno = 436 (0x1b4), region = 48  ;;  %s363_s13 = sand.u32 (!%p305_p6), 1, %s1837_s26  }
   0xe   : > { %p371_p7 = scmp.lt.s32.totalorder (!%p305_p6), %s1958_s15, 97  ;;  %s1539_s14 = smul.u32 (!%p305_p6), 104, %s363_s13 }
  0x10   : > { %s2100_s26 = scalar_lea.vmem (!%p305_p6), [#allocation3], %s1539_s14  }
  0x12   : > { %v583_v0 = vld [vmem:[%s2311_s4] sm:$0xff]  ;;  %vm721_vm0 = vcmask 1043456   ;;  %s372_s16 = scalar_select %p371_p7, %s1958_s15, 97  ;;  %vm584_vm1 = vcmask 64512   ;;  %vm681_vm2 = vcmask 31744   ;;  %vm1160_vm5 = vcmask 7168  }
  0x13   : > { %v680_v1 = vld [vmem:[%s2312_s5] sm:$0xf]  ;;  %639 = vmatpush.msra.mxu0 %v583_v0  ;;  %1537 = vmatpush.msra.mxu2 %v583_v0 }
  0x14   : > { %1497 = vmatpush.msk.msra.mxu1 %vm721_vm0, %v680_v1  ;;  %1538 = vmatpush.msk.msra.mxu3 %vm721_vm0, %v680_v1  ;;  %s1962_s17 = sshll.u32 %s372_s16, 3  ;;  %s1182_s16 = ssub.s32 (%p1947_p4), 98, %s1958_s15 }
  0x15   : > { %s1968_s20 = scalar_lea.vmem %s2307_s0, %s1962_s17  ;;  %s1974_s23 = scalar_lea.vmem %s2309_s2, %s1962_s17 }
  0x16   : > { %v427_v2 = vld [vmem:[%s1968_s20] sm:$0xff]  ;;  %v512_v4 = vld [vmem:[%s1974_s23 + $0x38] sm:$0xff]  ;;  %v428_v10 = vld [vmem:[%s1968_s20 + $0x8] sm:$0xff]  ;;  %s2032_s28 = scalar_lea.vmem %s2308_s1, %s1962_s17  ;;  %s2038_s11 = scalar_lea.vmem %s2310_s3, %s1962_s17 }
  0x17   : > { %v505_v3 = vld [vmem:[%s1974_s23] sm:$0xff]  ;;  %v440_v5 = vmul.f32 0.5, %v427_v2  ;;  %v525_v7 = vmul.f32 0.5, %v512_v4  ;;  %v434_v8 = vld [vmem:[%s1968_s20 + $0x38] sm:$0xff]  ;;  %v506_v11 = vld [vmem:[%s1974_s23 + $0x8] sm:$0xff]  ;;  %v441_v13 = vmul.f32 0.5, %v428_v10 }
  0x18   : > { %v518_v6 = vmul.f32 0.5, %v505_v3  ;;  %v447_v9 = vmul.f32 0.5, %v434_v8  ;;  %v513_v12 = vld [vmem:[%s1974_s23 + $0x40] sm:$0xff]  ;;  %v519_v15 = vmul.f32 0.5, %v506_v11  ;;  %v429_v20 = vld [vmem:[%s1968_s20 + $0x10] sm:$0xff]  ;;  %v514_v24 = vld [vmem:[%s1974_s23 + $0x48] sm:$0xff] }
  0x19   : > { %1629 = vtanh.f32 %v440_v5  ;;  %v435_v14 = vld [vmem:[%s1968_s20 + $0x40] sm:$0xff]  ;;  %v526_v16 = vmul.f32 0.5, %v513_v12  ;;  %v507_v22 = vld [vmem:[%s1974_s23 + $0x10] sm:$0xff]  ;;  %v442_v25 = vmul.f32 0.5, %v429_v20  ;;  %v436_v26 = vld [vmem:[%s1968_s20 + $0x48] sm:$0xff]  ;;  %v527_v29 = vmul.f32 0.5, %v514_v24 }
  0x1a   : > { %1631 = vtanh.f32 %v518_v6  ;;  %v448_v17 = vmul.f32 0.5, %v435_v14  ;;  %v520_v27 = vmul.f32 0.5, %v507_v22  ;;  %v449_v31 = vmul.f32 0.5, %v436_v26  ;;  %v430_v34 = vld [vmem:[%s1968_s20 + $0x18] sm:$0xff]  ;;  %v515_v36 = vld [vmem:[%s1974_s23 + $0x50] sm:$0xff]  ;;  %v431_v46 = vld [vmem:[%s1968_s20 + $0x20] sm:$0xff] }
  0x1b   : > { %1633 = vtanh.f32 %v525_v7  ;;  %v508_v35 = vld [vmem:[%s1974_s23 + $0x18] sm:$0xff]  ;;  %v443_v37 = vmul.f32 0.5, %v430_v34  ;;  %v437_v38 = vld [vmem:[%s1968_s20 + $0x50] sm:$0xff]  ;;  %v528_v41 = vmul.f32 0.5, %v515_v36  ;;  %v509_v47 = vld [vmem:[%s1974_s23 + $0x20] sm:$0xff]  ;;  %v444_v49 = vmul.f32 0.5, %v431_v46 }
  0x1c   : > { %1635 = vtanh.f32 %v447_v9  ;;  %v521_v39 = vmul.f32 0.5, %v508_v35  ;;  %v450_v43 = vmul.f32 0.5, %v437_v38  ;;  %v516_v48 = vld [vmem:[%s1974_s23 + $0x58] sm:$0xff]  ;;  %v522_v51 = vmul.f32 0.5, %v509_v47  ;;  %v432_v58 = vld [vmem:[%s1968_s20 + $0x28] sm:$0xff]  ;;  %v517_v60 = vld [vmem:[%s1974_s23 + $0x60] sm:$0xff] }
  0x1d   : > { %1637 = vtanh.f32 %v441_v13  ;;  %v438_v50 = vld [vmem:[%s1968_s20 + $0x58] sm:$0xff]  ;;  %v529_v53 = vmul.f32 0.5, %v516_v48  ;;  %v510_v59 = vld [vmem:[%s1974_s23 + $0x28] sm:$0xff]  ;;  %v439_v61 = vld [vmem:[%s1968_s20 + $0x60] sm:$0xff]  ;;  %v445_v62 = vmul.f32 0.5, %v432_v58  ;;  %v530_v1 = vmul.f32 0.5, %v517_v60 }
  0x1e   : > { %1639 = vtanh.f32 %v519_v15  ;;  %v451_v55 = vmul.f32 0.5, %v438_v50  ;;  %v523_v63 = vmul.f32 0.5, %v510_v59  ;;  %v452_v3 = vmul.f32 0.5, %v439_v61  ;;  %v433_v6 = vld [vmem:[%s1968_s20 + $0x30] sm:$0xff]  ;;  %v551_v20 = vld [vmem:[%s2038_s11 + $0x38] sm:$0xff]  ;;  %s1536_s17 = smul.u32 (%p1947_p4), 104, %s1935_s6 }
  0x1f   : > { %v1630_v18 = vpop.eup %1629  ;;  %1641 = vtanh.f32 %v526_v16  ;;  %v511_v7 = vld [vmem:[%s1974_s23 + $0x30] sm:$0xff]  ;;  %v446_v8 = vmul.f32 0.5, %v433_v6  ;;  %v466_v16 = vld [vmem:[%s2032_s28] sm:$0xff]  ;;  %v473_v22 = vld [vmem:[%s2032_s28 + $0x38] sm:$0xff]  ;;  %p1183_p8 = scmp.lt.s32.totalorder (%p1947_p4), %s1182_s16, 13 }
  0x20   : > { %v1632_v19 = vpop.eup %1631  ;;  %1484 = vmatmul.msk.f32.vlgmr.msra.gmra.mxu0 %vm584_vm1, %v1630_v18  ;;  %1643 = vtanh.f32 %v448_v17  ;;  %v524_v9 = vmul.f32 0.5, %v511_v7  ;;  %v544_v17 = vld [vmem:[%s2038_s11] sm:$0xff]  ;;  %v479_v18 = vmul.f32 0.5, %v466_v16  ;;  %s2221_s20 = scalar_lea.vmem (%p1947_p4), %s2314_s7, %s1536_s17  }
  0x21   : > { %v1634_v21 = vpop.eup %1633  ;;  %1498 = vmatmul.msk.f32.vlgmr.msra.gmra.mxu1 %vm681_vm2, %v1632_v19  ;;  %1645 = vtanh.f32 %v442_v25  ;;  %v557_v19 = vmul.f32 0.5, %v544_v17  ;;  %v486_v25 = vmul.f32 0.5, %v473_v22  ;;  %v470_v7 = vld [vmem:[%s2032_s28 + $0x20] sm:$0xff] }
  0x22   : > { %v1636_v23 = vpop.eup %1635  ;;  %1505 = vmatmul.msk.f32.vlgmr.msra.gmra.mxu3 %vm681_vm2, %v1634_v21  ;;  %1647 = vtanh.f32 %v520_v27  ;;  %v467_v21 = vld [vmem:[%s2032_s28 + $0x8] sm:$0xff] }
  0x23   : > { %1491 = vmatmul.msk.f32.vlgmr.msra.gmra.mxu2 %vm584_vm1, %v1636_v23  ;;  %v1638_v28 = vpop.eup %1637  ;;  %1649 = vtanh.f32 %v527_v29  ;;  %v564_v23 = vmul.f32 0.5, %v551_v20  ;;  %v480_v24 = vmul.f32 0.5, %v467_v21  ;;  %v547_v21 = vld [vmem:[%s2038_s11 + $0x18] sm:$0xff] }
  0x24   : > { %v1640_v30 = vpop.eup %1639  ;;  %1651 = vtanh.f32 %v449_v31 }
  0x25   : > { %v1642_v32 = vpop.eup %1641  ;;  %1653 = vtanh.f32 %v443_v37 }
  0x26   : > { %v1644_v33 = vpop.eup %1643  ;;  %1655 = vtanh.f32 %v521_v39 }
  0x27   : > { %v1646_v40 = vpop.eup %1645  ;;  %1657 = vtanh.f32 %v528_v41 }
  0x28   : > { %1485 = vmatmul.msk.f32.gmra.mxu0 %vm584_vm1, %v1638_v28  ;;  %v1648_v42 = vpop.eup %1647  ;;  %1659 = vtanh.f32 %v450_v43  ;;  %v545_v28 = vld [vmem:[%s2038_s11 + $0x8] sm:$0xff] }
  0x29   : > { %1499 = vmatmul.msk.f32.gmra.mxu1 %vm681_vm2, %v1640_v30  ;;  %v1650_v44 = vpop.eup %1649  ;;  %1661 = vtanh.f32 %v444_v49  ;;  %v468_v30 = vld [vmem:[%s2032_s28 + $0x10] sm:$0xff]  ;;  %v558_v35 = vmul.f32 0.5, %v545_v28  ;;  %v560_v28 = vmul.f32 0.5, %v547_v21 }
  0x2a   : > { %1506 = vmatmul.msk.f32.gmra.mxu3 %vm681_vm2, %v1642_v32  ;;  %v1652_v45 = vpop.eup %1651  ;;  %1663 = vtanh.f32 %v522_v51  ;;  %v481_v37 = vmul.f32 0.5, %v468_v30 }
  0x2b   : > { %1492 = vmatmul.msk.f32.gmra.mxu2 %vm584_vm1, %v1644_v33  ;;  %v1654_v52 = vpop.eup %1653  ;;  %1665 = vtanh.f32 %v529_v53  ;;  %v552_v33 = vld [vmem:[%s2038_s11 + $0x40] sm:$0xff] }
  0x2c   : > { %v1656_v54 = vpop.eup %1655  ;;  %1667 = vtanh.f32 %v451_v55  ;;  %v565_v39 = vmul.f32 0.5, %v552_v33 }
  0x2d   : > { %v1658_v56 = vpop.eup %1657  ;;  %1669 = vtanh.f32 %v445_v62 }
  0x2e   : > { %v1660_v57 = vpop.eup %1659  ;;  %1671 = vtanh.f32 %v523_v63  ;;  %v475_v63 = vld [vmem:[%s2032_s28 + $0x48] sm:$0xff] }
  0x2f   : > { %v1662_v0 = vpop.eup %1661  ;;  %1673 = vtanh.f32 %v530_v1 }
  0x30   : > { %1486 = vmatmul.msk.f32.gmra.mxu0 %vm584_vm1, %v1646_v40  ;;  %v1664_v2 = vpop.eup %1663  ;;  %1675 = vtanh.f32 %v452_v3 }
  0x31   : > { %1500 = vmatmul.msk.f32.gmra.mxu1 %vm681_vm2, %v1648_v42  ;;  %v1666_v4 = vpop.eup %1665  ;;  %1677 = vtanh.f32 %v446_v8  ;;  %v474_v42 = vld [vmem:[%s2032_s28 + $0x40] sm:$0xff]  ;;  %v488_v8 = vmul.f32 0.5, %v475_v63 }
  0x32   : > { %1507 = vmatmul.msk.f32.gmra.mxu3 %vm681_vm2, %v1650_v44  ;;  %v1668_v5 = vpop.eup %1667  ;;  %1679 = vtanh.f32 %v524_v9  ;;  %v546_v44 = vld [vmem:[%s2038_s11 + $0x10] sm:$0xff]  ;;  %v487_v51 = vmul.f32 0.5, %v474_v42 }
  0x33   : > { %1493 = vmatmul.msk.f32.gmra.mxu2 %vm584_vm1, %v1652_v45  ;;  %v1670_v10 = vpop.eup %1669  ;;  %1681 = vtanh.f32 %v479_v18 }
  0x34   : > { %v1672_v11 = vpop.eup %1671  ;;  %1683 = vtanh.f32 %v557_v19  ;;  %v548_v19 = vld [vmem:[%s2038_s11 + $0x20] sm:$0xff] }
  0x35   : > { %v1674_v12 = vpop.eup %1673  ;;  %1685 = vtanh.f32 %v564_v23 }
  0x36   : > { %v1676_v13 = vpop.eup %1675  ;;  %1687 = vtanh.f32 %v480_v24 }
  0x37   : > { %v1678_v14 = vpop.eup %1677  ;;  %1689 = vtanh.f32 %v486_v25 }
  0x38   : > { %1487 = vmatmul.msk.f32.gmra.mxu0 %vm584_vm1, %v1654_v52  ;;  %v1680_v15 = vpop.eup %1679  ;;  %1691 = vtanh.f32 %v558_v35  ;;  %v553_v52 = vld [vmem:[%s2038_s11 + $0x48] sm:$0xff] }
  0x39   : > { %1501 = vmatmul.msk.f32.gmra.mxu1 %vm681_vm2, %v1656_v54  ;;  %v1682_v26 = vpop.eup %1681  ;;  %1693 = vtanh.f32 %v481_v37  ;;  %v559_v54 = vmul.f32 0.5, %v546_v44  ;;  %v566_v59 = vmul.f32 0.5, %v553_v52  ;;  %v477_v37 = vld [vmem:[%s2032_s28 + $0x58] sm:$0xff] }
  0x3a   : > { %1508 = vmatmul.msk.f32.gmra.mxu3 %vm681_vm2, %v1658_v56  ;;  %v1684_v27 = vpop.eup %1683  ;;  %1695 = vtanh.f32 %v565_v39  ;;  %v490_v44 = vmul.f32 0.5, %v477_v37 }
  0x3b   : > { %1494 = vmatmul.msk.f32.gmra.mxu2 %vm584_vm1, %v1660_v57  ;;  %v1686_v40 = vpop.eup %1685  ;;  %1697 = vtanh.f32 %v487_v51 }
  0x3c   : > { %v1688_v41 = vpop.eup %1687  ;;  %1699 = vtanh.f32 %v559_v54  ;;  %v550_v54 = vld [vmem:[%s2038_s11 + $0x30] sm:$0xff] }
  0x3d   : > { %v1690_v43 = vpop.eup %1689  ;;  %1701 = vtanh.f32 %v566_v59 }
  0x3e   : > { %v1692_v57 = vpop.eup %1691  ;;  %1703 = vtanh.f32 %v488_v8  ;;  %v556_v8 = vld [vmem:[%s2038_s11 + $0x60] sm:$0xff] }
  0x3f   : > { %v1694_v60 = vpop.eup %1693 }
  0x40   : > { %1488 = vmatmul.msk.f32.gmra.mxu0 %vm584_vm1, %v1662_v0  ;;  %v1696_v61 = vpop.eup %1695 }
  0x41   : > { %1502 = vmatmul.msk.f32.gmra.mxu1 %vm681_vm2, %v1664_v2  ;;  %v469_v2 = vld [vmem:[%s2032_s28 + $0x18] sm:$0xff]  ;;  %v1698_v9 = vpop.eup %1697 }
  0x42   : > { %1509 = vmatmul.msk.f32.gmra.mxu3 %vm681_vm2, %v1666_v4 }
  0x43   : > { %1495 = vmatmul.msk.f32.gmra.mxu2 %vm584_vm1, %v1668_v5 }
  0x48   : > { %1489 = vmatmul.msk.f32.gmra.mxu0 %vm584_vm1, %v1670_v10 }
  0x49   : > { %1503 = vmatmul.msk.f32.gmra.mxu1 %vm681_vm2, %v1672_v11 }
  0x4a   : > { %1510 = vmatmul.msk.f32.gmra.mxu3 %vm681_vm2, %v1674_v12 }
  0x4b   : > { %1496 = vmatmul.msk.f32.gmra.mxu2 %vm584_vm1, %v1676_v13  ;;  %v482_v13 = vmul.f32 0.5, %v469_v2 }
  0x4d   : > { %1705 = vtanh.f32 %v482_v13  ;;  %v555_v13 = vld [vmem:[%s2038_s11 + $0x58] sm:$0xff] }
  0x50   : > { %1490 = vmatmul.msk.f32.gmra.mxu0 %vm584_vm1, %v1678_v14  ;;  %v1700_v14 = vpop.eup %1699 }
  0x51   : > { %1504 = vmatmul.msk.f32.gmra.mxu1 %vm681_vm2, %v1680_v15  ;;  %v483_v15 = vmul.f32 0.5, %v470_v7  ;;  %v1702_v16 = vpop.eup %1701 }
  0x53   : > { %1707 = vtanh.f32 %v483_v15 }
  0x9d   : > { %v641_v29 = vpop.f32.mrf.mxu0 }
  0x9e   : > { %v781_v31 = vmul.f32 %v1682_v26, %v641_v29  ;;  %v742_v32 = vpop.f32.mrf.mxu1  ;;  %v561_v26 = vmul.f32 0.5, %v548_v19 }
  0x9f   : > { %v833_v34 = vmul.f32 %v1684_v27, %v742_v32  ;;  %v549_v27 = vld [vmem:[%s2038_s11 + $0x28] sm:$0xff]  ;;  %v1704_v32 = vpop.eup %1703 }
  0xa0   : > { %v794_v36 = vsel %vm584_vm1, %v781_v31, 0.0  ;;  %v1706_v33 = vpop.eup %1705  ;;  %1709 = vtanh.f32 %v561_v26 }
  0xa1   : > { %v846_v38 = vsel %vm681_vm2, %v833_v34, 0.0  ;;  %795 = vadd.xlane.f32.xlu0 %v794_v36  ;;  %v562_v34 = vmul.f32 0.5, %v549_v27  ;;  %v1708_v35 = vpop.eup %1707  ;;  %1711 = vtanh.f32 %v560_v28 }
  0xa2   : > { %847 = vadd.xlane.f32.xlu1 %v846_v38 }
  0xa3   : > { %1713 = vtanh.f32 %v562_v34 }
  0xa4   : > { %1715 = vtanh.f32 %v490_v44 }
  0xa5   : > { %v763_v45 = vpop.f32.mrf.mxu3  ;;  %v644_v46 = vpop.f32.mrf.mxu0 }
  0xa6   : > { %v840_v47 = vmul.f32 %v1686_v40, %v763_v45  ;;  %v782_v48 = vmul.f32 %v1688_v41, %v644_v46  ;;  %v662_v49 = vpop.f32.mrf.mxu2  ;;  %v745_v50 = vpop.f32.mrf.mxu1  ;;  %v476_v40 = vld [vmem:[%s2032_s28 + $0x50] sm:$0xff]  ;;  %v478_v45 = vld [vmem:[%s2032_s28 + $0x60] sm:$0xff] }
  0xa7   : > { %v788_v53 = vmul.f32 %v1690_v43, %v662_v49  ;;  %v834_v62 = vmul.f32 %v1692_v57, %v745_v50  ;;  %v489_v46 = vmul.f32 0.5, %v476_v40  ;;  %v1710_v49 = vpop.eup %1709  ;;  %v491_v52 = vmul.f32 0.5, %v478_v45  ;;  %v471_v57 = vld [vmem:[%s2032_s28 + $0x28] sm:$0xff] }
  0xa8   : > { %v867_v55 = vsel %vm681_vm2, %v840_v47, 0.0  ;;  %v797_v56 = vsel %vm584_vm1, %v782_v48, 0.0  ;;  %v1712_v51 = vpop.eup %1711  ;;  %v484_v2 = vmul.f32 0.5, %v471_v57 }
  0xa9   : > { %868 = vadd.xlane.f32.xlu2 %v867_v55  ;;  %v815_v58 = vsel %vm584_vm1, %v788_v53, 0.0  ;;  %798 = vadd.xlane.f32.xlu0 %v797_v56  ;;  %v849_v10 = vsel %vm681_vm2, %v834_v62, 0.0  ;;  %v472_v53 = vld [vmem:[%s2032_s28 + $0x30] sm:$0xff]  ;;  %v1714_v55 = vpop.eup %1713  ;;  %1717 = vtanh.f32 %v489_v46  ;;  %v2092_v46 = vstv %s898_s12 }
  0xaa   : > { %816 = vadd.xlane.f32.xlu1 %v815_v58  ;;  %1719 = vtanh.f32 %v491_v52 }
  0xad   : > { %v647_v0 = vpop.f32.mrf.mxu0  ;;  %v766_v1 = vpop.f32.mrf.mxu3 }
  0xae   : > { %v783_v3 = vmul.f32 %v1694_v60, %v647_v0  ;;  %v665_v4 = vpop.f32.mrf.mxu2  ;;  %v748_v5 = vpop.f32.mrf.mxu1  ;;  %v841_v6 = vmul.f32 %v1696_v61, %v766_v1  ;;  %v485_v61 = vmul.f32 0.5, %v472_v53  ;;  %v563_v0 = vmul.f32 0.5, %v550_v54 }
  0xaf   : > { %v789_v17 = vmul.f32 %v1698_v9, %v665_v4  ;;  %v835_v18 = vmul.f32 %v1700_v14, %v748_v5  ;;  %v1716_v4 = vpop.eup %1715 }
  0xb0   : > { %v870_v11 = vsel %vm681_vm2, %v841_v6, 0.0  ;;  %v800_v12 = vsel %vm584_vm1, %v783_v3, 0.0  ;;  %1721 = vtanh.f32 %v485_v61  ;;  %v1718_v7 = vpop.eup %1717 }
  0xb1   : > { %850 = vadd.xlane.f32.xlu2 %v849_v10  ;;  %871 = vadd.xlane.f32.xlu0 %v870_v11  ;;  %v818_v29 = vsel %vm584_vm1, %v789_v17, 0.0  ;;  %v852_v30 = vsel %vm681_vm2, %v835_v18, 0.0  ;;  %1723 = vtanh.f32 %v563_v0  ;;  %v1720_v9 = vpop.eup %1719  ;;  %v554_v11 = vld [vmem:[%s2038_s11 + $0x50] sm:$0xff] }
  0xb2   : > { %801 = vadd.xlane.f32.xlu1 %v800_v12  ;;  %1725 = vtanh.f32 %v484_v2  ;;  %v567_v19 = vmul.f32 0.5, %v554_v11 }
  0xb5   : > { %v650_v20 = vpop.f32.mrf.mxu0  ;;  %v769_v22 = vpop.f32.mrf.mxu3 }
  0xb6   : > { %v668_v23 = vpop.f32.mrf.mxu2  ;;  %v751_v24 = vpop.f32.mrf.mxu1  ;;  %v842_v25 = vmul.f32 %v1702_v16, %v769_v22  ;;  %v784_v38 = vmul.f32 %v1706_v33, %v650_v20  ;;  %v569_v16 = vmul.f32 0.5, %v556_v8 }
  0xb7   : > { %v790_v36 = vmul.f32 %v1704_v32, %v668_v23  ;;  %v836_v59 = vmul.f32 %v1712_v51, %v751_v24  ;;  %v1722_v17 = vpop.eup %1721  ;;  %v568_v24 = vmul.f32 0.5, %v555_v13 }
  0xb8   : > { %v873_v31 = vsel %vm681_vm2, %v842_v25, 0.0  ;;  %v803_v50 = vsel %vm584_vm1, %v784_v38, 0.0  ;;  %v1724_v20 = vpop.eup %1723  ;;  %1727 = vtanh.f32 %v569_v16 }
  0xb9   : > { %819 = vadd.xlane.f32.xlu2 %v818_v29  ;;  %853 = vadd.xlane.f32.xlu0 %v852_v30  ;;  %v821_v47 = vsel %vm584_vm1, %v790_v36, 0.0  ;;  %v855_v6 = vsel %vm681_vm2, %v836_v59, 0.0  ;;  %v1726_v25 = vpop.eup %1725  ;;  %1729 = vtanh.f32 %v567_v19 }
  0xba   : > { %874 = vadd.xlane.f32.xlu1 %v873_v31  ;;  %1731 = vtanh.f32 %v568_v24 }
  0xbd   : > { %v653_v39 = vpop.f32.mrf.mxu0  ;;  %v772_v58 = vpop.f32.mrf.mxu3 }
  0xbe   : > { %v785_v41 = vmul.f32 %v1708_v35, %v653_v39  ;;  %v671_v42 = vpop.f32.mrf.mxu2  ;;  %v754_v43 = vpop.f32.mrf.mxu1 }
  0xbf   : > { %v837_v56 = vmul.f32 %v1710_v49, %v754_v43  ;;  %v791_v12 = vmul.f32 %v1718_v7, %v671_v42  ;;  %v1728_v33 = vpop.eup %1727 }
  0xc0   : > { %v806_v48 = vsel %vm584_vm1, %v785_v41, 0.0  ;;  %v1730_v36 = vpop.eup %1729 }
  0xc1   : > { %822 = vadd.xlane.f32.xlu0 %v821_v47  ;;  %807 = vadd.xlane.f32.xlu2 %v806_v48  ;;  %v858_v3 = vsel %vm681_vm2, %v837_v56, 0.0  ;;  %v824_v27 = vsel %vm584_vm1, %v791_v12, 0.0  ;;  %v1732_v37 = vpop.eup %1731  ;;  %v843_v39 = vmul.f32 %v1730_v36, %v772_v58 }
  0xc2   : > { %804 = vadd.xlane.f32.xlu1 %v803_v50 }
  0xc3   : > { %v876_v42 = vsel %vm681_vm2, %v843_v39, 0.0 }
  0xc5   : > { %v656_v60 = vpop.f32.mrf.mxu0  ;;  %v775_v15 = vpop.f32.mrf.mxu3 }
  0xc6   : > { %v674_v62 = vpop.f32.mrf.mxu2  ;;  %v757_v63 = vpop.f32.mrf.mxu1  ;;  %v786_v30 = vmul.f32 %v1726_v25, %v656_v60  ;;  %v844_v40 = vmul.f32 %v1732_v37, %v775_v15 }
  0xc7   : > { %v838_v1 = vmul.f32 %v1714_v55, %v757_v63  ;;  %v792_v10 = vmul.f32 %v1716_v4, %v674_v62 }
  0xc8   : > { %v809_v34 = vsel %vm584_vm1, %v786_v30, 0.0  ;;  %v879_v43 = vsel %vm681_vm2, %v844_v40, 0.0 }
  0xc9   : > { %v861_v5 = vsel %vm681_vm2, %v838_v1, 0.0  ;;  %859 = vadd.xlane.f32.xlu2 %v858_v3  ;;  %v827_v21 = vsel %vm584_vm1, %v792_v10, 0.0 }
  0xca   : > { %862 = vadd.xlane.f32.xlu0 %v861_v5  ;;  %856 = vadd.xlane.f32.xlu1 %v855_v6 }
  0xcd   : > { %v659_v22 = vpop.f32.mrf.mxu0  ;;  %v778_v35 = vpop.f32.mrf.mxu3 }
  0xce   : > { %v677_v14 = vpop.f32.mrf.mxu2  ;;  %v760_v23 = vpop.f32.mrf.mxu1  ;;  %v787_v28 = vmul.f32 %v1722_v17, %v659_v22  ;;  %v845_v38 = vmul.f32 %v1728_v33, %v778_v35 }
  0xcf   : > { %v793_v18 = vmul.f32 %v1720_v9, %v677_v14  ;;  %v839_v29 = vmul.f32 %v1724_v20, %v760_v23 }
  0xd0   : > { %v812_v32 = vsel %vm584_vm1, %v787_v28, 0.0  ;;  %v882_v41 = vsel %vm681_vm2, %v845_v38, 0.0 }
  0xd1   : > { %v830_v26 = vsel %vm584_vm1, %v793_v18, 0.0  ;;  %828 = vadd.xlane.f32.xlu2 %v827_v21  ;;  %v864_v31 = vsel %vm681_vm2, %v839_v29, 0.0 }
  0xd2   : > { %831 = vadd.xlane.f32.xlu0 %v830_v26  ;;  %825 = vadd.xlane.f32.xlu1 %v824_v27 }
  0xd9   : > { %810 = vadd.xlane.f32.xlu2 %v809_v34 }
  0xda   : > { %865 = vadd.xlane.f32.xlu1 %v864_v31  ;;  %813 = vadd.xlane.f32.xlu0 %v812_v32 }
  0xe1   : > { %877 = vadd.xlane.f32.xlu2 %v876_v42 }
  0xe2   : > { %883 = vadd.xlane.f32.xlu1 %v882_v41  ;;  %880 = vadd.xlane.f32.xlu0 %v879_v43 }
 0x114   : > { %v796_v44 = vpop.xlane.xlu0 %795 }
 0x115   : > { %v848_v45 = vpop.xlane.xlu1 %847 }
 0x116   : > { %v885_v47 = vadd.f32 %v848_v45, %v796_v44 }
 0x118   : > { %v900_v48 = vadd.f32 %v2092_v46, %v885_v47 }
 0x11a   : > { %v1511_v49 = vmul.f32 -1.442695, %v900_v48 }
 0x11c   : > { %1733 = vpow2.f32 %v1511_v49  ;;  %v869_v50 = vpop.xlane.xlu2 %868  ;;  %v799_v51 = vpop.xlane.xlu0 %798 }
 0x11d   : > { %v817_v52 = vpop.xlane.xlu1 %816 }
 0x11e   : > { %v892_v53 = vadd.f32 %v869_v50, %v817_v52 }
 0x120   : > { %v907_v54 = vadd.f32 %v2092_v46, %v892_v53 }
 0x122   : > { %v1734_v55 = vpop.eup %1733  ;;  %v1518_v56 = vmul.f32 -1.442695, %v907_v54 }
 0x123   : > { %v952_v57 = vadd.f32 1.0, %v1734_v55 }
 0x124   : > { %1735 = vpow2.f32 %v1518_v56  ;;  %v851_v58 = vpop.xlane.xlu2 %850  ;;  %v872_v59 = vpop.xlane.xlu0 %871 }
 0x125   : > { %1737 = vrcp.f32 %v952_v57  ;;  %v802_v60 = vpop.xlane.xlu1 %801  ;;  %v886_v61 = vadd.f32 %v851_v58, %v799_v51  ;;  %v974_v10 = vand.u32 2147483647, %v952_v57  ;;  %v976_v11 = vand.u32 2147483648, %v952_v57 }
 0x126   : > { %vm970_vm4 = vweird.f32 %v952_v57 }
 0x127   : > { %v901_v62 = vadd.f32 %v2092_v46, %v886_v61  ;;  %v977_v20 = vor.u32 1.1754944e-38, %v976_v11  ;;  %vm975_vm7 = vcmp.eq.f32.partialorder %v974_v10, 8.507059e+37 }
 0x129   : > { %v1512_v0 = vmul.f32 -1.442695, %v901_v62 }
 0x12a   : > { %v1736_v63 = vpop.eup %1735 }
 0x12b   : > { %v1738_v1 = vpop.eup %1737  ;;  %v959_v2 = vadd.f32 1.0, %v1736_v63  ;;  %1739 = vpow2.f32 %v1512_v0 }
 0x12c   : > { %v966_v3 = vmul.f32 %v1738_v1, %v952_v57  ;;  %v820_v4 = vpop.xlane.xlu2 %819  ;;  %v854_v5 = vpop.xlane.xlu0 %853  ;;  %vm971_vm3 = vweird.f32 %v1738_v1 }
 0x12d   : > { %1741 = vrcp.f32 %v959_v2  ;;  %v875_v6 = vpop.xlane.xlu1 %874  ;;  %v893_v8 = vadd.f32 %v872_v59, %v820_v4  ;;  %v887_v9 = vadd.f32 %v854_v5, %v802_v60  ;;  %vm972_vm6 = vmor %vm970_vm4, %vm971_vm3  ;;  %v1081_v30 = vand.u32 2147483648, %v959_v2 }
 0x12e   : > { %v967_v7 = vsub.f32 1.0, %v966_v3  ;;  %v1079_v32 = vand.u32 2147483647, %v959_v2  ;;  %vm1075_vm9 = vweird.f32 %v959_v2 }
 0x12f   : > { %v908_v13 = vadd.f32 %v2092_v46, %v893_v8  ;;  %v902_v14 = vadd.f32 %v2092_v46, %v887_v9  ;;  %v1082_v38 = vor.u32 1.1754944e-38, %v1081_v30 }
 0x130   : > { %v968_v12 = vmul.f32 %v1738_v1, %v967_v7  ;;  %vm1080_vm11 = vcmp.eq.f32.partialorder %v1079_v32, 8.507059e+37 }
 0x131   : > { %v1740_v15 = vpop.eup %1739  ;;  %v1519_v17 = vmul.f32 -1.442695, %v908_v13  ;;  %v1513_v18 = vmul.f32 -1.442695, %v902_v14 }
 0x132   : > { %v969_v16 = vadd.f32 %v1738_v1, %v968_v12  ;;  %v953_v21 = vadd.f32 1.0, %v1740_v15 }
 0x133   : > { %v1742_v19 = vpop.eup %1741  ;;  %1743 = vpow2.f32 %v1519_v17 }
 0x134   : > { %v973_v22 = vsel %vm972_vm6, %v1738_v1, %v969_v16  ;;  %v1071_v23 = vmul.f32 %v1742_v19, %v959_v2  ;;  %v823_v24 = vpop.xlane.xlu0 %822  ;;  %v808_v25 = vpop.xlane.xlu2 %807  ;;  %1745 = vrcp.f32 %v953_v21  ;;  %vm1076_vm8 = vweird.f32 %v1742_v19 }
 0x135   : > { %v978_v26 = vsel %vm975_vm7, %v977_v20, %v973_v22  ;;  %v805_v27 = vpop.xlane.xlu1 %804  ;;  %1747 = vpow2.f32 %v1513_v18  ;;  %v894_v29 = vadd.f32 %v875_v6, %v823_v24  ;;  %vm1077_vm10 = vmor %vm1075_vm9, %vm1076_vm8  ;;  %v991_v51 = vand.u32 2147483648, %v953_v21 }
 0x136   : > { %1161 = vst.msk [vmem:[%s2100_s26] sm:$0xff] %vm1160_vm5, %v978_v26  ;;  %v1072_v28 = vsub.f32 1.0, %v1071_v23  ;;  %v989_v54 = vand.u32 2147483647, %v953_v21  ;;  %vm985_vm13 = vweird.f32 %v953_v21 }
 0x137   : > { %v909_v33 = vadd.f32 %v2092_v46, %v894_v29  ;;  %v992_v60 = vor.u32 1.1754944e-38, %v991_v51 }
 0x138   : > { %v1073_v31 = vmul.f32 %v1742_v19, %v1072_v28  ;;  %vm990_vm15 = vcmp.eq.f32.partialorder %v989_v54, 8.507059e+37 }
 0x139   : > { %v1744_v34 = vpop.eup %1743  ;;  %v1520_v36 = vmul.f32 -1.442695, %v909_v33 }
 0x13a   : > { %v1074_v35 = vadd.f32 %v1742_v19, %v1073_v31  ;;  %v1746_v37 = vpop.eup %1745  ;;  %v960_v39 = vadd.f32 1.0, %v1744_v34 }
 0x13b   : > { %v1748_v40 = vpop.eup %1747  ;;  %v981_v42 = vmul.f32 %v1746_v37, %v953_v21  ;;  %1749 = vpow2.f32 %v1520_v36  ;;  %vm986_vm12 = vweird.f32 %v1746_v37 }
 0x13c   : > { %v1078_v41 = vsel %vm1077_vm10, %v1742_v19, %v1074_v35  ;;  %v860_v43 = vpop.xlane.xlu2 %859  ;;  %1751 = vrcp.f32 %v960_v39  ;;  %v954_v49 = vadd.f32 1.0, %v1748_v40  ;;  %vm987_vm14 = vmor %vm985_vm13, %vm986_vm12  ;;  %v1094_v8 = vand.u32 2147483647, %v960_v39 }
 0x13d   : > { %v1083_v44 = vsel %vm1080_vm11, %v1082_v38, %v1078_v41  ;;  %v2105_v45 = vpop.xlane.xlu0 %862  ;;  %v857_v47 = vpop.xlane.xlu1 %856  ;;  %v982_v48 = vsub.f32 1.0, %v981_v42  ;;  %v889_v52 = vadd.f32 %v860_v43, %v808_v25  ;;  %v1096_v9 = vand.u32 2147483648, %v960_v39 }
 0x13e   : > { %1168 = vst.msk [vmem:[%s2100_s26 + $0x38] sm:$0xff] %vm1160_vm5, %v1083_v44  ;;  %v888_v50 = vadd.f32 %v857_v47, %v805_v27  ;;  %1753 = vrcp.f32 %v954_v49  ;;  %v1004_v12 = vand.u32 2147483647, %v954_v49  ;;  %v1006_v14 = vand.u32 2147483648, %v954_v49 }
 0x13f   : > { %v983_v53 = vmul.f32 %v1746_v37, %v982_v48  ;;  %v904_v56 = vadd.f32 %v2092_v46, %v889_v52  ;;  %vm1090_vm1 = vweird.f32 %v960_v39  ;;  %vm1095_vm3 = vcmp.eq.f32.partialorder %v1094_v8, 8.507059e+37 }
 0x140   : > { %v903_v55 = vadd.f32 %v2092_v46, %v888_v50  ;;  %v1097_v17 = vor.u32 1.1754944e-38, %v1096_v9  ;;  %vm1000_vm6 = vweird.f32 %v954_v49  ;;  %vm2122_vm7 = vcmp.eq.f32.partialorder %v1004_v12, 8.507059e+37 }
 0x141   : > { %v1750_v57 = vpop.eup %1749  ;;  %v984_v58 = vadd.f32 %v1746_v37, %v983_v53  ;;  %v1515_v1 = vmul.f32 -1.442695, %v904_v56  ;;  %v1007_v27 = vor.u32 1.1754944e-38, %v1006_v14 }
 0x142   : > { %v1752_v59 = vpop.eup %1751  ;;  %v2111_v61 = vadd.f32 1.0, %v1750_v57  ;;  %v1514_v62 = vmul.f32 -1.442695, %v903_v55 }
 0x143   : > { %v988_v63 = vsel %vm987_vm14, %v1746_v37, %v984_v58  ;;  %v1086_v0 = vmul.f32 %v1752_v59, %v960_v39  ;;  %vm1091_vm0 = vweird.f32 %v1752_v59 }
 0x144   : > { %v2113_v2 = vpop.xlane.xlu2 %828  ;;  %v993_v3 = vsel %vm990_vm15, %v992_v60, %v988_v63  ;;  %1755 = vrcp.f32 %v2111_v61  ;;  %v1754_v6 = vpop.eup %1753  ;;  %vm1092_vm2 = vmor %vm1090_vm1, %vm1091_vm0  ;;  %v1109_v36 = vand.u32 2147483647, %v2111_v61  ;;  %v1111_v37 = vand.u32 2147483648, %v2111_v61 }
 0x145   : > { %v2116_v4 = vpop.xlane.xlu0 %831  ;;  %v2118_v5 = vpop.xlane.xlu1 %825  ;;  %1162 = vst.msk [vmem:[%s2100_s26 + $0x8] sm:$0xff] %vm1160_vm5, %v993_v3  ;;  %v1087_v7 = vsub.f32 1.0, %v1086_v0  ;;  %1757 = vpow2.f32 %v1514_v62  ;;  %v996_v10 = vmul.f32 %v1754_v6, %v954_v49  ;;  %vm1001_vm4 = vweird.f32 %v1754_v6 }
 0x146   : > { %1759 = vpow2.f32 %v1515_v1  ;;  %vm1002_vm8 = vmor %vm1000_vm6, %vm1001_vm4  ;;  %vm1105_vm10 = vweird.f32 %v2111_v61  ;;  %v1112_v43 = vor.u32 1.1754944e-38, %v1111_v37  ;;  %vm1110_vm12 = vcmp.eq.f32.partialorder %v1109_v36, 8.507059e+37 }
 0x147   : > { %v1088_v11 = vmul.f32 %v1752_v59, %v1087_v7  ;;  %v997_v13 = vsub.f32 1.0, %v996_v10 }
 0x149   : > { %v1089_v15 = vadd.f32 %v1752_v59, %v1088_v11  ;;  %v998_v18 = vmul.f32 %v1754_v6, %v997_v13 }
 0x14a   : > { %v1756_v16 = vpop.eup %1755 }
 0x14b   : > { %v1758_v19 = vpop.eup %1757  ;;  %v1093_v20 = vsel %vm1092_vm2, %v1752_v59, %v1089_v15  ;;  %v1101_v22 = vmul.f32 %v1756_v16, %v2111_v61  ;;  %v999_v26 = vadd.f32 %v1754_v6, %v998_v18  ;;  %vm1106_vm9 = vweird.f32 %v1756_v16 }
 0x14c   : > { %v811_v23 = vpop.xlane.xlu2 %810  ;;  %v1760_v24 = vpop.eup %1759  ;;  %v1098_v25 = vsel %vm1095_vm3, %v1097_v17, %v1093_v20  ;;  %v2127_v28 = vadd.f32 1.0, %v1758_v19  ;;  %vm1107_vm11 = vmor %vm1105_vm10, %vm1106_vm9 }
 0x14d   : > { %v866_v29 = vpop.xlane.xlu1 %865  ;;  %v814_v30 = vpop.xlane.xlu0 %813  ;;  %1169 = vst.msk [vmem:[%s2100_s26 + $0x40] sm:$0xff] %vm1160_vm5, %v1098_v25  ;;  %v1102_v31 = vsub.f32 1.0, %v1101_v22  ;;  %v2132_v32 = vadd.f32 1.0, %v1760_v24  ;;  %v890_v33 = vadd.f32 %v2105_v45, %v811_v23  ;;  %v1003_v35 = vsel %vm1002_vm8, %v1754_v6, %v999_v26 }
 0x14e   : > { %v891_v34 = vadd.f32 %v866_v29, %v814_v30  ;;  %1761 = vrcp.f32 %v2127_v28  ;;  %v1008_v38 = vsel %vm2122_vm7, %v1007_v27, %v1003_v35  ;;  %vm1015_vm13 = vweird.f32 %v2127_v28 }
 0x14f   : > { %v1103_v39 = vmul.f32 %v1756_v16, %v1102_v31  ;;  %1763 = vrcp.f32 %v2132_v32  ;;  %1163 = vst.msk [vmem:[%s2100_s26 + $0x10] sm:$0xff] %vm1160_vm5, %v1008_v38  ;;  %v905_v41 = vadd.f32 %v2092_v46, %v890_v33  ;;  %v1019_v60 = vand.u32 2147483647, %v2127_v28 }
 0x150   : > { %v906_v42 = vadd.f32 %v2092_v46, %v891_v34  ;;  %v1021_v63 = vand.u32 2147483648, %v2127_v28  ;;  %v1036_v1 = vand.u32 2147483648, %v2132_v32  ;;  %v1034_v8 = vand.u32 2147483647, %v2132_v32 }
 0x151   : > { %v1104_v40 = vadd.f32 %v1756_v16, %v1103_v39  ;;  %v1516_v45 = vmul.f32 -1.442695, %v905_v41  ;;  %vm1020_vm0 = vcmp.eq.f32.partialorder %v1019_v60, 8.507059e+37  ;;  %vm1030_vm2 = vweird.f32 %v2132_v32 }
 0x152   : > { %v1517_v47 = vmul.f32 -1.442695, %v906_v42  ;;  %v1022_v12 = vor.u32 1.1754944e-38, %v1021_v63  ;;  %v1037_v15 = vor.u32 1.1754944e-38, %v1036_v1  ;;  %vm1035_vm4 = vcmp.eq.f32.partialorder %v1034_v8, 8.507059e+37 }
 0x153   : > { %v1108_v44 = vsel %vm1107_vm11, %v1756_v16, %v1104_v40  ;;  %1765 = vpow2.f32 %v1516_v45 }
 0x154   : > { %v878_v48 = vpop.xlane.xlu2 %877  ;;  %v1762_v49 = vpop.eup %1761  ;;  %v1113_v50 = vsel %vm1110_vm12, %v1112_v43, %v1108_v44  ;;  %1767 = vpow2.f32 %v1517_v47 }
 0x155   : > { %v884_v51 = vpop.xlane.xlu1 %883  ;;  %v895_v52 = vadd.f32 %v878_v48, %v2118_v5  ;;  %v881_v53 = vpop.xlane.xlu0 %880  ;;  %1170 = vst.msk [vmem:[%s2100_s26 + $0x48] sm:$0xff] %vm1160_vm5, %v1113_v50  ;;  %v1011_v55 = vmul.f32 %v1762_v49, %v2127_v28  ;;  %vm1016_vm14 = vweird.f32 %v1762_v49 }
 0x156   : > { %v1764_v54 = vpop.eup %1763  ;;  %v897_v56 = vadd.f32 %v884_v51, %v2116_v4  ;;  %v896_v62 = vadd.f32 %v881_v53, %v2113_v2  ;;  %vm1017_vm1 = vmor %vm1015_vm13, %vm1016_vm14 }
 0x157   : > { %v1026_v57 = vmul.f32 %v1764_v54, %v2132_v32  ;;  %v910_v58 = vadd.f32 %v2092_v46, %v895_v52  ;;  %v1012_v59 = vsub.f32 1.0, %v1011_v55  ;;  %vm1031_vm15 = vweird.f32 %v1764_v54 }
 0x158   : > { %v912_v61 = vadd.f32 %v2092_v46, %v897_v56  ;;  %v911_v6 = vadd.f32 %v2092_v46, %v896_v62  ;;  %vm1032_vm3 = vmor %vm1030_vm2, %vm1031_vm15 }
 0x159   : > { %v1027_v0 = vsub.f32 1.0, %v1026_v57  ;;  %v1521_v3 = vmul.f32 -1.442695, %v910_v58  ;;  %v1013_v4 = vmul.f32 %v1762_v49, %v1012_v59  ;;  %v1766_v9 = vpop.eup %1765 }
 0x15a   : > { %v1523_v5 = vmul.f32 -1.442695, %v912_v61  ;;  %v1522_v2 = vmul.f32 -1.442695, %v911_v6  ;;  %v1768_v11 = vpop.eup %1767  ;;  %v957_v46 = vadd.f32 1.0, %v1766_v9 }
 0x15b   : > { %v1028_v7 = vmul.f32 %v1764_v54, %v1027_v0  ;;  %1769 = vpow2.f32 %v1521_v3  ;;  %v1014_v10 = vadd.f32 %v1762_v49, %v1013_v4  ;;  %v958_v16 = vadd.f32 1.0, %v1768_v11 }
 0x15c   : > { %1771 = vpow2.f32 %v1523_v5  ;;  %v1049_v28 = vand.u32 2147483647, %v957_v46  ;;  %v1051_v31 = vand.u32 2147483648, %v957_v46  ;;  %vm1045_vm6 = vweird.f32 %v957_v46 }
 0x15d   : > { %v1029_v13 = vadd.f32 %v1764_v54, %v1028_v7  ;;  %v1018_v14 = vsel %vm1017_vm1, %v1762_v49, %v1014_v10  ;;  %1773 = vpow2.f32 %v1522_v2  ;;  %v1064_v32 = vand.u32 2147483647, %v958_v16 }
 0x15e   : > { %v1023_v17 = vsel %vm1020_vm0, %v1022_v12, %v1018_v14  ;;  %1775 = vrcp.f32 %v957_v46  ;;  %v1066_v35 = vand.u32 2147483648, %v958_v16  ;;  %vm1060_vm8 = vweird.f32 %v958_v16 }
 0x15f   : > { %v1033_v18 = vsel %vm1032_vm3, %v1764_v54, %v1029_v13  ;;  %1164 = vst.msk [vmem:[%s2100_s26 + $0x18] sm:$0xff] %vm1160_vm5, %v1023_v17  ;;  %1777 = vrcp.f32 %v958_v16  ;;  %vm2178_vm9 = vcmp.eq.f32.partialorder %v1049_v28, 8.507059e+37  ;;  %v1052_v43 = vor.u32 1.1754944e-38, %v1051_v31 }
 0x160   : > { %v1038_v19 = vsel %vm1035_vm4, %v1037_v15, %v1033_v18  ;;  %vm2183_vm11 = vcmp.eq.f32.partialorder %v1064_v32, 8.507059e+37  ;;  %v1067_v48 = vor.u32 1.1754944e-38, %v1066_v35 }
 0x161   : > { %v1770_v20 = vpop.eup %1769  ;;  %1165 = vst.msk [vmem:[%s2100_s26 + $0x20] sm:$0xff] %vm1160_vm5, %v1038_v19 }
 0x162   : > { %v1772_v21 = vpop.eup %1771  ;;  %v2169_v22 = vadd.f32 1.0, %v1770_v20 }
 0x163   : > { %v2171_v23 = vadd.f32 1.0, %v1772_v21  ;;  %v1774_v24 = vpop.eup %1773 }
 0x164   : > { %1779 = vrcp.f32 %v2169_v22  ;;  %v1776_v25 = vpop.eup %1775  ;;  %v2175_v33 = vadd.f32 1.0, %v1774_v24  ;;  %v1124_v50 = vand.u32 2147483647, %v2169_v22  ;;  %v1126_v54 = vand.u32 2147483648, %v2169_v22 }
 0x165   : > { %1781 = vrcp.f32 %v2171_v23  ;;  %v1778_v26 = vpop.eup %1777  ;;  %v1041_v27 = vmul.f32 %v1776_v25, %v957_v46  ;;  %vm1046_vm7 = vweird.f32 %v1776_v25  ;;  %v1156_v53 = vand.u32 2147483648, %v2171_v23 }
 0x166   : > { %v1056_v29 = vmul.f32 %v1778_v26, %v958_v16  ;;  %1783 = vrcp.f32 %v2175_v33  ;;  %vm1061_vm10 = vweird.f32 %v1778_v26  ;;  %vm1047_vm12 = vmor %vm1045_vm6, %vm1046_vm7  ;;  %v1154_v61 = vand.u32 2147483647, %v2171_v23 }
 0x167   : > { %v1042_v30 = vsub.f32 1.0, %v1041_v27  ;;  %vm1062_vm13 = vmor %vm1060_vm8, %vm1061_vm10  ;;  %vm1120_vm0 = vweird.f32 %v2169_v22  ;;  %vm1150_vm1 = vweird.f32 %v2171_v23  ;;  %v1127_v1 = vor.u32 1.1754944e-38, %v1126_v54 }
 0x168   : > { %v1057_v34 = vsub.f32 1.0, %v1056_v29  ;;  %v1157_v3 = vor.u32 1.1754944e-38, %v1156_v53  ;;  %vm1125_vm4 = vcmp.eq.f32.partialorder %v1124_v50, 8.507059e+37  ;;  %vm1155_vm6 = vcmp.eq.f32.partialorder %v1154_v61, 8.507059e+37 }
 0x169   : > { %v1043_v37 = vmul.f32 %v1776_v25, %v1042_v30  ;;  %v1141_v8 = vand.u32 2147483648, %v2175_v33  ;;  %v1139_v2 = vand.u32 2147483647, %v2175_v33  ;;  %vm1135_vm8 = vweird.f32 %v2175_v33 }
 0x16a   : > { %v1780_v36 = vpop.eup %1779  ;;  %v1058_v40 = vmul.f32 %v1778_v26, %v1057_v34 }
 0x16b   : > { %v1782_v38 = vpop.eup %1781  ;;  %v1116_v41 = vmul.f32 %v1780_v36, %v2169_v22  ;;  %v1044_v42 = vadd.f32 %v1776_v25, %v1043_v37  ;;  %vm1121_vm14 = vweird.f32 %v1780_v36  ;;  %v1142_v12 = vor.u32 1.1754944e-38, %v1141_v8 }
 0x16c   : > { %v1146_v45 = vmul.f32 %v1782_v38, %v2171_v23  ;;  %v1059_v47 = vadd.f32 %v1778_v26, %v1058_v40  ;;  %v1784_v58 = vpop.eup %1783  ;;  %vm1151_vm15 = vweird.f32 %v1782_v38  ;;  %vm1122_vm2 = vmor %vm1120_vm0, %vm1121_vm14  ;;  %vm1140_vm10 = vcmp.eq.f32.partialorder %v1139_v2, 8.507059e+37 }
 0x16d   : > { %v1117_v49 = vsub.f32 1.0, %v1116_v41  ;;  %v1048_v51 = vsel %vm1047_vm12, %v1776_v25, %v1044_v42  ;;  %v1131_v63 = vmul.f32 %v1784_v58, %v2175_v33  ;;  %vm1152_vm3 = vmor %vm1150_vm1, %vm1151_vm15  ;;  %vm1136_vm7 = vweird.f32 %v1784_v58 }
 0x16e   : > { %v1147_v52 = vsub.f32 1.0, %v1146_v45  ;;  %v1053_v55 = vsel %vm2178_vm9, %v1052_v43, %v1048_v51  ;;  %v1063_v56 = vsel %vm1062_vm13, %v1778_v26, %v1059_v47  ;;  %vm1137_vm9 = vmor %vm1135_vm8, %vm1136_vm7 }
 0x16f   : > { %v1118_v57 = vmul.f32 %v1780_v36, %v1117_v49  ;;  %1166 = vst.msk [vmem:[%s2100_s26 + $0x28] sm:$0xff] %vm1160_vm5, %v1053_v55  ;;  %v1068_v59 = vsel %vm2183_vm11, %v1067_v48, %v1063_v56  ;;  %v1132_v5 = vsub.f32 1.0, %v1131_v63 }
 0x170   : > { %v1148_v60 = vmul.f32 %v1782_v38, %v1147_v52  ;;  %1167 = vst.msk [vmem:[%s2100_s26 + $0x30] sm:$0xff] %vm1160_vm5, %v1068_v59 }
 0x171   : > { %v1119_v62 = vadd.f32 %v1780_v36, %v1118_v57  ;;  %v1133_v10 = vmul.f32 %v1784_v58, %v1132_v5 }
 0x172   : > { %v1149_v0 = vadd.f32 %v1782_v38, %v1148_v60 }
 0x173   : > { %v1123_v4 = vsel %vm1122_vm2, %v1780_v36, %v1119_v62  ;;  %v1134_v11 = vadd.f32 %v1784_v58, %v1133_v10  ;;  %1180 = sbr.rel (!%p1947_p4) target bundleno = 436 (0x1b4), region = 52 }
 0x174   : > { %v1153_v6 = vsel %vm1152_vm3, %v1782_v38, %v1149_v0  ;;  %v1128_v7 = vsel %vm1125_vm4, %v1127_v1, %v1123_v4 }
 0x175   : > { %v1158_v9 = vsel %vm1155_vm6, %v1157_v3, %v1153_v6  ;;  %1171 = vst.msk [vmem:[%s2100_s26 + $0x50] sm:$0xff] %vm1160_vm5, %v1128_v7  ;;  %v1138_v13 = vsel %vm1137_vm9, %v1784_v58, %v1134_v11 }
 0x176   : > { %1173 = vst.msk [vmem:[%s2100_s26 + $0x60] sm:$0xff] %vm1160_vm5, %v1158_v9  ;;  %v1143_v46 = vsel %vm1140_vm10, %v1142_v12, %v1138_v13 }
 0x177   : > { %1172 = vst.msk [vmem:[%s2100_s26 + $0x58] sm:$0xff] %vm1160_vm5, %v1143_v46 }
 0x178   : > { %s2331_s16 = smov (!%p1183_p8, %s1182_s16), 13 }
 0x179   : > { %s1524_s21 = sshll.u32 %s2331_s16, 3 }
 0x17a   : > { %p1527_p9 = scmp.eq.s32.totalorder %s1524_s21, 0 }
 0x17b   : > { %1785 = sdivrem.u32 (!%p1527_p9), %s2331_s16, 13 }
 0x17c   : > { %1191 = sbr.rel (%p1527_p9) target bundleno = 436 (0x1b4), region = 56 }
 0x184   : > { %s2227_s10 = spop.drf %1785 }
 0x185   : > { %s1787_s22 = spop.drf %1785  ;;  %p1528_p10 = scmp.le.s32.totalorder %s2227_s10, 0 }
 0x186   : > { %s2322_s6 = smov (!%p1528_p10), %s2221_s20  ;;  %s2323_s15 = smov (!%p1528_p10), %s2100_s26 }
 0x187   : > { %1414 = sbr.rel (%p1528_p10) target bundleno = 410 (0x19a), region = 141  ;;  %s2236_s23 = smov (!%p1528_p10), 0  }
 0x188   : > { %s2238_s24 = smov (!%p1528_p10), 0  }
 0x18c LB: >> { %v1280_v14 = vld [vmem:[%s1853_s15] sm:$0xff]  ;;  %v1282_v15 = vld [vmem:[%s1853_s15 + $0x8] sm:$0xff]  ;;  %v1284_v16 = vld [vmem:[%s1853_s15 + $0x10] sm:$0xff]  ;;  %s1306_s25 = sadd.s32 1, %s1857_s23  ;;  %s1274_s24 = sadd.s32 1, %s1861_s24   ;;  %s1861_s24 = sphi %s2238_s24, %s1274_s24   ;;  %s1857_s23 = sphi %s2236_s23, %s2326_s23   ;;  %s1853_s15 = sphi %s2323_s15, %s2325_s15   ;;  %s1849_s6 = sphi %s2322_s6, %s2324_s6  }
 0x18d   : >> { %1281 = vst [vmem:[%s1849_s6] sm:$0xff] %v1280_v14  ;;  %v1286_v17 = vld [vmem:[%s1853_s15 + $0x18] sm:$0xff]  ;;  %p1307_p11 = scmp.ge.s32.totalorder %s1306_s25, %s2227_s10  ;;  %v1288_v18 = vld [vmem:[%s1853_s15 + $0x20] sm:$0xff]  ;;  %v1290_v19 = vld [vmem:[%s1853_s15 + $0x28] sm:$0xff]  ;;  %p1273_p12 = scmp.ge.s32.totalorder %s1274_s24, %s2227_s10 }
 0x18e   : >> { %1283 = vst [vmem:[%s1849_s6 + $0x8] sm:$0xff] %v1282_v15  ;;  %v1292_v20 = vld [vmem:[%s1853_s15 + $0x30] sm:$0xff]  ;;  %v1294_v21 = vld [vmem:[%s1853_s15 + $0x38] sm:$0xff]  ;;  %v1296_v22 = vld [vmem:[%s1853_s15 + $0x40] sm:$0xff] }
 0x18f   : >> { %1285 = vst [vmem:[%s1849_s6 + $0x10] sm:$0xff] %v1284_v16  ;;  %s2333_s25 = smov (%p1307_p11, %s1306_s25), 0  ;;  %v1298_v23 = vld [vmem:[%s1853_s15 + $0x48] sm:$0xff]  ;;  %v1300_v24 = vld [vmem:[%s1853_s15 + $0x50] sm:$0xff]  ;;  %v1302_v25 = vld [vmem:[%s1853_s15 + $0x58] sm:$0xff] }
 0x190   : >> { %1287 = vst [vmem:[%s1849_s6 + $0x18] sm:$0xff] %v1286_v17  ;;  %s1309_s28 = smul.u32 104, %s2333_s25  ;;  %v1304_v26 = vld [vmem:[%s1853_s15 + $0x60] sm:$0xff]  ;;  %s2326_s23 = smov %s2333_s25 }
 0x191   : >> { %1289 = vst [vmem:[%s1849_s6 + $0x20] sm:$0xff] %v1288_v18 }
 0x192   : >> { %1291 = vst [vmem:[%s1849_s6 + $0x28] sm:$0xff] %v1290_v19  ;;  %s1311_s30 = scalar_lea.vmem %s2100_s26, %s1309_s28 [#allocation3]   ;;  %s1312_s8 = scalar_lea.vmem %s2221_s20, %s1309_s28  }
 0x193   : >> { %1293 = vst [vmem:[%s1849_s6 + $0x30] sm:$0xff] %v1292_v20  ;;  %s2325_s15 = smov %s1311_s30 }
 0x194   : >> { %1295 = vst [vmem:[%s1849_s6 + $0x38] sm:$0xff] %v1294_v21 }
 0x195   : >> { %1297 = vst [vmem:[%s1849_s6 + $0x40] sm:$0xff] %v1296_v22  ;;  %1276 = sbr.rel (!%p1273_p12) target bundleno = 396 (0x18c), region = 147 }
 0x196   : >> { %1299 = vst [vmem:[%s1849_s6 + $0x48] sm:$0xff] %v1298_v23 }
 0x197   : >> { %1301 = vst [vmem:[%s1849_s6 + $0x50] sm:$0xff] %v1300_v24 }
 0x198   : >> { %1303 = vst [vmem:[%s1849_s6 + $0x58] sm:$0xff] %v1302_v25 }
 0x199   : >> { %1305 = vst [vmem:[%s1849_s6 + $0x60] sm:$0xff] %v1304_v26  ;;  %s2324_s6 = smov %s1312_s8 }
 0x19a PF: > { %1788 = sdivrem.u32 %s2331_s16, 13 }
 0x19b   : > { %s1529_s11 = smul.u32 104, %s2227_s10 }
 0x19d   : > { %s2292_s12 = scalar_lea.vmem %s2100_s26, %s1529_s11 [#allocation3]   ;;  %s1319_s13 = scalar_lea.vmem %s2221_s20, %s1529_s11  }
 0x1a3   : > { %s1789_s14 = spop.drf %1788 }
 0x1a4   : > { %s1790_s17 = spop.drf %1788 }
 0x1a5   : > { %p1531_p13 = scmp.le.s32.totalorder %s1790_s17, 0 }
 0x1a6   : > { %s1863_s18 = smov (!%p1531_p13), %s1319_s13   ;;  %s1867_s19 = smov (!%p1531_p13), %s2292_s12  }
 0x1a7   : > { %1428 = sbr.rel (%p1531_p13) target bundleno = 436 (0x1b4), region = 152  ;;  %s1871_s21 = smov (!%p1531_p13), 0  }
 0x1a8   : > { %s1875_s22 = smov (!%p1531_p13), 0  }
 0x1ac LB: >> { %v1329_v27 = vld [vmem:[%s1869_s19] sm:$0xff]  ;;  %s1331_s26 = sadd.s32 1, %s1873_s21  ;;  %s1323_s22 = sadd.s32 1, %s1877_s22   ;;  %s1877_s22 = sphi %s1875_s22, %s1323_s22   ;;  %s1873_s21 = sphi %s1871_s21, %s1872_s21   ;;  %s1869_s19 = sphi %s1867_s19, %s1336_s19   ;;  %s1865_s18 = sphi %s1863_s18, %s1337_s18  }
 0x1ad   : >> { %1330 = vst [vmem:[%s1865_s18] sm:$0xff] %v1329_v27  ;;  %p1332_p0 = scmp.ge.s32.totalorder %s1331_s26, %s1790_s17  ;;  %p1322_p1 = scmp.ge.s32.totalorder %s1323_s22, %s1790_s17 }
 0x1af   : >> { %s2335_s26 = smov (%p1332_p0, %s1331_s26), 0  ;;  %1325 = sbr.rel (!%p1322_p1) target bundleno = 428 (0x1ac), region = 158 }
 0x1b0   : >> { %s1532_s16 = sshll.u32 %s2335_s26, 3  ;;  %s1872_s21 = smov %s2335_s26  }
 0x1b1   : >> { %s1336_s19 = scalar_lea.vmem %s2292_s12, %s1532_s16 [#allocation3]   ;;  %s1337_s18 = scalar_lea.vmem %s1319_s13, %s1532_s16  }
 0x1b4 PF: > { %p15_p2 = scmp.ge.s32.totalorder %s1937_s29, 10   ;;  %s2327_s26 = smov %s1841_s27 }
 0x1b5   : > { %s2328_s27 = smov %s1945_s9  ;;  %s2329_s28 = smov %s1937_s29 }
 0x1b6   :  { %17 = sbr.rel (!%p15_p2) target bundleno = 4 (0x4), region = 169 }

</bundles_post_ra>
